<compile_context>
chip_gen: v7x
topology: tpu7x:2x2x1
jax: 0.10.0
libtpu: 0.0.40
codegen_flags: <defaults>
</compile_context>

<pallas_src>
import functools

import jax
import jax.numpy as jnp
from jax.experimental import pallas as pl
from jax.experimental.pallas import tpu as pltpu


# ----------------------------- Pallas kernel ------------------------------- #
def _decoder_kernel(x_ref, rep_ref,
                    w1x_ref, w1r_ref, b1_ref,
                    w2_ref, b2_ref,
                    wh_ref, bh_ref,
                    out_ref, *, min_sigma, compute_sigma, y_dim):
    """One row-tile: 2x (Linear+ReLU), then fused [mu | sigma] head."""
    # Layer 1: h = x @ w1_x + rep @ w1_rep + b1   (bf16 inputs, f32 accum)
    h = (jnp.dot(x_ref[...], w1x_ref[...], preferred_element_type=jnp.float32)
         + jnp.dot(rep_ref[...], w1r_ref[...], preferred_element_type=jnp.float32)
         + b1_ref[...])
    h = jnp.maximum(h, 0.0)                                     # ReLU (f32)

    # Layer 2 (feed MXU in bf16, accumulate in f32)
    h = jnp.dot(h.astype(jnp.bfloat16), w2_ref[...],
                preferred_element_type=jnp.float32) + b2_ref[...]
    h = jnp.maximum(h, 0.0)                                     # ReLU (f32)

    # Fused head: columns [0:y_dim] = mu, [y_dim:2*y_dim] = pre_sigma
    head = jnp.dot(h.astype(jnp.bfloat16), wh_ref[...],
                   preferred_element_type=jnp.float32) + bh_ref[...]

    if compute_sigma:
        # sigma = min_sigma + (1 - min_sigma) * softplus(pre_sigma)
        sig = min_sigma + (1.0 - min_sigma) * jax.nn.softplus(head)
        col = jax.lax.broadcasted_iota(jnp.int32, head.shape, dimension=1)
        out_ref[...] = jnp.where(col < y_dim, head, sig)        # one lane-dense store
    else:
        out_ref[...] = head                                     # mu only


# ------------------------------ tile planner -------------------------------- #
def _round_up(v, m):
    return ((v + m - 1) // m) * m


def _plan_tiles(M, *, single_tile_max=2048, max_tile=1024):
    """Pick (tile_m, padded_M).

    Small M  -> one full tile (grid=1): no pipeline-step overhead.
    Large M  -> ~max_tile rows per tile, grid forced even so v7x's two
                TensorCores load-balance; M is zero-padded to tile_m*grid.
    """
    if M <= single_tile_max:
        t = _round_up(max(M, 8), 8)
        return t, t
    grid = pl.cdiv(M, max_tile)
    if grid % 2:                       # v7x: even grid balances the 2 TCs
        grid += 1
    tile_m = _round_up(pl.cdiv(M, grid), 8)
    return tile_m, tile_m * grid


# ------------------------------ host wrapper -------------------------------- #
def decoder_forward(x, rep, params, *, fixed_sigma=None, min_sigma=0.1):
    """
    x   : (B, N, x_dim)
    rep : (B, N, rep_dim)
    Returns (mu, sigma), each (B, N, y_dim) float32.
    """
    B, N, x_dim = x.shape
    rep_dim = rep.shape[-1]
    w1, b1, w2, b2, wmu, bmu, wsig, bsig = params
    h_dim = w1.shape[1]
    y_dim = wmu.shape[1]
    M = B * N

    # bf16 activation streams (f32 accumulation inside the kernel).
    x_flat = x.reshape(M, x_dim).astype(jnp.bfloat16)
    rep_flat = rep.reshape(M, rep_dim).astype(jnp.bfloat16)

    # Split layer-1 weight so the kernel never needs the concatenated input.
    w1x = w1[:x_dim].astype(jnp.bfloat16)                       # (x_dim, h_dim)
    w1r = w1[x_dim:].astype(jnp.bfloat16)                       # (rep_dim, h_dim)
    w2_bf = w2.astype(jnp.bfloat16)
    b1_f = b1.astype(jnp.float32)
    b2_f = b2.astype(jnp.float32)

    compute_sigma = fixed_sigma is None
    if compute_sigma:
        w_head = jnp.concatenate([wmu, wsig], axis=1).astype(jnp.bfloat16)  # (h, 2y)
        b_head = jnp.concatenate([bmu, bsig], axis=1).astype(jnp.float32)   # (1, 2y)
        out_cols = 2 * y_dim
    else:
        # Sigma head compiled out entirely when fixed_sigma is given.
        w_head = wmu.astype(jnp.bfloat16)
        b_head = bmu.astype(jnp.float32)
        out_cols = y_dim

    # Robust tiling: pad rows instead of forcing tile_m | M.
    tile_m, M_pad = _plan_tiles(M)
    if M_pad != M:
        pad = M_pad - M
        x_flat = jnp.pad(x_flat, ((0, pad), (0, 0)))
        rep_flat = jnp.pad(rep_flat, ((0, pad), (0, 0)))
    grid = (M_pad // tile_m,)

    full = lambda shape: pl.BlockSpec(shape, lambda i: (0, 0))   # VMEM-resident
    # TODO(synk): at very large h_dim, single-buffer these constant specs with
    # pipeline_mode=pl.Buffered(1) to halve the weight VMEM footprint on v7x.

    flops = 2 * M_pad * ((x_dim + rep_dim) * h_dim + h_dim * h_dim
                         + h_dim * out_cols)
    bytes_acc = (M_pad * (x_dim + rep_dim) * 2          # bf16 inputs
                 + ((x_dim + rep_dim) * h_dim + h_dim * h_dim
                    + h_dim * out_cols) * 2             # bf16 weights
                 + (2 * h_dim + out_cols) * 4           # f32 biases
                 + M_pad * out_cols * 4)                # f32 output
    transcend = 2 * M_pad * out_cols if compute_sigma else 0

    out_flat = pl.pallas_call(
        functools.partial(_decoder_kernel,
                          min_sigma=float(min_sigma),
                          compute_sigma=compute_sigma,
                          y_dim=y_dim),
        out_shape=jax.ShapeDtypeStruct((M_pad, out_cols), jnp.float32),
        grid_spec=pl.GridSpec(
            grid=grid,
            in_specs=[
                pl.BlockSpec((tile_m, x_dim), lambda i: (i, 0)),
                pl.BlockSpec((tile_m, rep_dim), lambda i: (i, 0)),
                full((x_dim, h_dim)), full((rep_dim, h_dim)), full((1, h_dim)),
                full((h_dim, h_dim)), full((1, h_dim)),
                full((h_dim, out_cols)), full((1, out_cols)),
            ],
            out_specs=pl.BlockSpec((tile_m, out_cols), lambda i: (i, 0)),
        ),
        compiler_params=pltpu.CompilerParams(
            dimension_semantics=("parallel",)),
        cost_estimate=pl.CostEstimate(flops=flops,
                                      transcendentals=transcend,
                                      bytes_accessed=bytes_acc),
    )(x_flat, rep_flat, w1x, w1r, b1_f, w2_bf, b2_f, w_head, b_head)

    out_flat = out_flat[:M]                                     # drop padded rows
    if compute_sigma:
        mu = out_flat[:, :y_dim].reshape(B, N, y_dim)
        sigma = out_flat[:, y_dim:].reshape(B, N, y_dim)
    else:
        mu = out_flat.reshape(B, N, y_dim)
        # PyTorch branch fills a tensor with fixed_sigma.
        sigma = jnp.full((B, N, y_dim), float(fixed_sigma), dtype=jnp.float32)
    return mu, sigma


# --------------------------- deterministic params --------------------------- #
def init_decoder_params(key, x_dim, rep_dim, h_dim, y_dim):
    """PyTorch-Linear-style uniform(-1/sqrt(fan_in), 1/sqrt(fan_in)) init.

    Weights stored as (in_features, out_features) so the kernel does x @ W + b,
    mathematically identical to torch's x @ W_t.T + b.
    """
    def linear(k, fan_in, fan_out):
        kw, kb = jax.random.split(k)
        bound = 1.0 / (fan_in ** 0.5)
        w = jax.random.uniform(kw, (fan_in, fan_out), jnp.float32, -bound, bound)
        b = jax.random.uniform(kb, (1, fan_out), jnp.float32, -bound, bound)
        return w, b

    k1, k2, k3, k4 = jax.random.split(key, 4)
    w1, b1 = linear(k1, x_dim + rep_dim, h_dim)
    w2, b2 = linear(k2, h_dim, h_dim)
    wmu, bmu = linear(k3, h_dim, y_dim)
    wsig, bsig = linear(k4, h_dim, y_dim)
    return (w1, b1, w2, b2, wmu, bmu, wsig, bsig)


# ------------------------------ reference (JAX) ------------------------------ #
def decoder_forward_ref(x, rep, params, *, fixed_sigma=None, min_sigma=0.1):
    B, N, x_dim = x.shape
    rep_dim = rep.shape[-1]
    w1, b1, w2, b2, wmu, bmu, wsig, bsig = params
    xz = jnp.concatenate([x.reshape(B * N, x_dim), rep.reshape(B * N, rep_dim)], -1)
    h = jnp.maximum(xz @ w1 + b1, 0.0)
    h = jnp.maximum(h @ w2 + b2, 0.0)
    mu = (h @ wmu + bmu).reshape(B, N, -1)
    pre_sigma = (h @ wsig + bsig).reshape(B, N, -1)
    if fixed_sigma is None:
        sigma = min_sigma + (1.0 - min_sigma) * jax.nn.softplus(pre_sigma)
    else:
        sigma = jnp.full_like(mu, float(fixed_sigma))
    return mu, sigma


if __name__ == "__main__":
    # Small shapes implied by the module's forward.
    x_dim, rep_dim, h_dim, y_dim = 3, 32, 32, 2
    min_sigma = 0.1
    TOL = dict(atol=3e-2, rtol=3e-2)   # bf16 input streams vs f32 reference

    key = jax.random.PRNGKey(0)
    kp, kx1, kr1, kx2, kr2 = jax.random.split(key, 5)
    params = init_decoder_params(kp, x_dim, rep_dim, h_dim, y_dim)

    # --- case 1: small M (B=2, N=16 -> M=32), learned-sigma path ---
    B, N = 2, 16
    x = jax.random.normal(kx1, (B, N, x_dim), jnp.float32)
    rep = jax.random.normal(kr1, (B, N, rep_dim), jnp.float32)

    mu, sigma = decoder_forward(x, rep, params, fixed_sigma=None, min_sigma=min_sigma)
    jax.block_until_ready((mu, sigma))
    mu_ref, sigma_ref = decoder_forward_ref(x, rep, params,
                                            fixed_sigma=None, min_sigma=min_sigma)
    assert mu.shape == (B, N, y_dim) and sigma.shape == (B, N, y_dim)
    assert jnp.allclose(mu, mu_ref, **TOL)
    assert jnp.allclose(sigma, sigma_ref, **TOL)

    # --- case 2: fixed-sigma path (sigma head compiled out of the kernel) ---
    mu_f, sigma_f = decoder_forward(x, rep, params, fixed_sigma=0.5,
                                    min_sigma=min_sigma)
    jax.block_until_ready((mu_f, sigma_f))
    mu_f_ref, sigma_f_ref = decoder_forward_ref(x, rep, params,
                                                fixed_sigma=0.5, min_sigma=min_sigma)
    assert jnp.allclose(mu_f, mu_f_ref, **TOL)
    assert jnp.allclose(sigma_f, sigma_f_ref, **TOL)

    # --- case 3: awkward M (B=3, N=47 -> M=141) exercising the row-padding path ---
    B2, N2 = 3, 47
    x2 = jax.random.normal(kx2, (B2, N2, x_dim), jnp.float32)
    rep2 = jax.random.normal(kr2, (B2, N2, rep_dim), jnp.float32)
    mu2, sigma2 = decoder_forward(x2, rep2, params, fixed_sigma=None,
                                  min_sigma=min_sigma)
    jax.block_until_ready((mu2, sigma2))
    mu2_ref, sigma2_ref = decoder_forward_ref(x2, rep2, params,
                                              fixed_sigma=None, min_sigma=min_sigma)
    assert mu2.shape == (B2, N2, y_dim) and sigma2.shape == (B2, N2, y_dim)
    assert jnp.allclose(mu2, mu2_ref, **TOL)
    assert jnp.allclose(sigma2, sigma2_ref, **TOL)

    print("KERNEL_OK")
</pallas_src>

<mosaic_0001>
module attributes {stable_mosaic.version = 11 : i64} {
  func.func @_decoder_kernel(%arg0: i32, %arg1: memref<32x3xbf16, #tpu.memory_space<vmem>>, %arg2: memref<32x32xbf16, #tpu.memory_space<vmem>>, %arg3: memref<3x32xbf16, #tpu.memory_space<vmem>>, %arg4: memref<32x32xbf16, #tpu.memory_space<vmem>>, %arg5: memref<1x32xf32, #tpu.memory_space<vmem>>, %arg6: memref<32x32xbf16, #tpu.memory_space<vmem>>, %arg7: memref<1x32xf32, #tpu.memory_space<vmem>>, %arg8: memref<32x4xbf16, #tpu.memory_space<vmem>>, %arg9: memref<1x4xf32, #tpu.memory_space<vmem>>, %arg10: memref<32x4xf32, #tpu.memory_space<vmem>>) attributes {dimension_semantics = [#tpu.dimension_semantics<parallel>], iteration_bounds = array<i64: 1>, scalar_prefetch = 0 : i64, scratch_operands = 0 : i64, tpu.core_type = #tpu.core_type<tc>, window_params = [{transform_indices = @transform_0, window_bounds = array<i64: 32, 3>}, {transform_indices = @transform_1, window_bounds = array<i64: 32, 32>}, {pipeline_mode = #tpu.pipeline_mode<synchronous>, transform_indices = @transform_2, window_bounds = array<i64: 3, 32>}, {pipeline_mode = #tpu.pipeline_mode<synchronous>, transform_indices = @transform_3, window_bounds = array<i64: 32, 32>}, {pipeline_mode = #tpu.pipeline_mode<synchronous>, transform_indices = @transform_4, window_bounds = array<i64: 1, 32>}, {pipeline_mode = #tpu.pipeline_mode<synchronous>, transform_indices = @transform_5, window_bounds = array<i64: 32, 32>}, {pipeline_mode = #tpu.pipeline_mode<synchronous>, transform_indices = @transform_6, window_bounds = array<i64: 1, 32>}, {pipeline_mode = #tpu.pipeline_mode<synchronous>, transform_indices = @transform_7, window_bounds = array<i64: 32, 4>}, {pipeline_mode = #tpu.pipeline_mode<synchronous>, transform_indices = @transform_8, window_bounds = array<i64: 1, 4>}, {transform_indices = @transform_9, window_bounds = array<i64: 32, 4>}]} {
    %c0 = arith.constant 0 : index
    %c0_0 = arith.constant 0 : index
    %0 = vector.load %arg1[%c0, %c0_0] : memref<32x3xbf16, #tpu.memory_space<vmem>>, vector<32x3xbf16>
    %c0_1 = arith.constant 0 : index
    %c0_2 = arith.constant 0 : index
    %1 = vector.load %arg3[%c0_1, %c0_2] : memref<3x32xbf16, #tpu.memory_space<vmem>>, vector<3x32xbf16>
    %cst = arith.constant dense<0.000000e+00> : vector<32x32xf32>
    %2 = tpu.matmul %0, %1, %cst {dimension_numbers = #tpu.dot_dimension_numbers<[1], [0], [0], [1], [0, 0, 1, 1], [], []>} : vector<32x3xbf16>, vector<3x32xbf16>, vector<32x32xf32> -> vector<32x32xf32>
    %c0_3 = arith.constant 0 : index
    %c0_4 = arith.constant 0 : index
    %3 = vector.load %arg2[%c0_3, %c0_4] : memref<32x32xbf16, #tpu.memory_space<vmem>>, vector<32x32xbf16>
    %c0_5 = arith.constant 0 : index
    %c0_6 = arith.constant 0 : index
    %4 = vector.load %arg4[%c0_5, %c0_6] : memref<32x32xbf16, #tpu.memory_space<vmem>>, vector<32x32xbf16>
    %cst_7 = arith.constant dense<0.000000e+00> : vector<32x32xf32>
    %5 = tpu.matmul %3, %4, %cst_7 {dimension_numbers = #tpu.dot_dimension_numbers<[1], [0], [0], [1], [0, 0, 1, 1], [], []>} : vector<32x32xbf16>, vector<32x32xbf16>, vector<32x32xf32> -> vector<32x32xf32>
    %6 = arith.addf %2, %5 : vector<32x32xf32>
    %c0_8 = arith.constant 0 : index
    %c0_9 = arith.constant 0 : index
    %7 = vector.load %arg5[%c0_8, %c0_9] : memref<1x32xf32, #tpu.memory_space<vmem>>, vector<1x32xf32>
    %8 = vector.broadcast %7 : vector<1x32xf32> to vector<32x32xf32>
    %9 = arith.addf %6, %8 : vector<32x32xf32>
    %cst_10 = arith.constant 0.000000e+00 : f32
    %10 = vector.broadcast %cst_10 : f32 to vector<32x32xf32>
    %11 = arith.maximumf %9, %10 : vector<32x32xf32>
    %12 = arith.truncf %11 : vector<32x32xf32> to vector<32x32xbf16>
    %c0_11 = arith.constant 0 : index
    %c0_12 = arith.constant 0 : index
    %13 = vector.load %arg6[%c0_11, %c0_12] : memref<32x32xbf16, #tpu.memory_space<vmem>>, vector<32x32xbf16>
    %cst_13 = arith.constant dense<0.000000e+00> : vector<32x32xf32>
    %14 = tpu.matmul %12, %13, %cst_13 {dimension_numbers = #tpu.dot_dimension_numbers<[1], [0], [0], [1], [0, 0, 1, 1], [], []>} : vector<32x32xbf16>, vector<32x32xbf16>, vector<32x32xf32> -> vector<32x32xf32>
    %c0_14 = arith.constant 0 : index
    %c0_15 = arith.constant 0 : index
    %15 = vector.load %arg7[%c0_14, %c0_15] : memref<1x32xf32, #tpu.memory_space<vmem>>, vector<1x32xf32>
    %16 = vector.broadcast %15 : vector<1x32xf32> to vector<32x32xf32>
    %17 = arith.addf %14, %16 : vector<32x32xf32>
    %cst_16 = arith.constant 0.000000e+00 : f32
    %18 = vector.broadcast %cst_16 : f32 to vector<32x32xf32>
    %19 = arith.maximumf %17, %18 : vector<32x32xf32>
    %20 = arith.truncf %19 : vector<32x32xf32> to vector<32x32xbf16>
    %c0_17 = arith.constant 0 : index
    %c0_18 = arith.constant 0 : index
    %21 = vector.load %arg8[%c0_17, %c0_18] : memref<32x4xbf16, #tpu.memory_space<vmem>>, vector<32x4xbf16>
    %cst_19 = arith.constant dense<0.000000e+00> : vector<32x4xf32>
    %22 = tpu.matmul %20, %21, %cst_19 {dimension_numbers = #tpu.dot_dimension_numbers<[1], [0], [0], [1], [0, 0, 1, 1], [], []>} : vector<32x32xbf16>, vector<32x4xbf16>, vector<32x4xf32> -> vector<32x4xf32>
    %c0_20 = arith.constant 0 : index
    %c0_21 = arith.constant 0 : index
    %23 = vector.load %arg9[%c0_20, %c0_21] : memref<1x4xf32, #tpu.memory_space<vmem>>, vector<1x4xf32>
    %24 = vector.broadcast %23 : vector<1x4xf32> to vector<32x4xf32>
    %25 = arith.addf %22, %24 : vector<32x4xf32>
    %cst_22 = arith.constant 0.000000e+00 : f32
    %26 = vector.broadcast %cst_22 : f32 to vector<32x4xf32>
    %27 = arith.maximumf %25, %26 : vector<32x4xf32>
    %28 = vector.broadcast %cst_22 : f32 to vector<32x4xf32>
    %29 = arith.subf %25, %28 : vector<32x4xf32>
    %30 = arith.cmpf one, %29, %29 : vector<32x4xf32>
    %31 = vector.broadcast %cst_22 : f32 to vector<32x4xf32>
    %32 = arith.addf %25, %31 : vector<32x4xf32>
    %33 = math.absf %29 : vector<32x4xf32>
    %cst_23 = arith.constant 0.000000e+00 : f32
    %34 = vector.broadcast %cst_23 : f32 to vector<32x4xf32>
    %35 = arith.subf %34, %33 : vector<32x4xf32>
    %36 = math.exp %35 : vector<32x4xf32>
    %37 = math.log1p %36 : vector<32x4xf32>
    %38 = arith.addf %27, %37 : vector<32x4xf32>
    %39 = arith.select %30, %32, %38 : vector<32x4xi1>, vector<32x4xf32>
    %cst_24 = arith.constant 0.899999976 : f32
    %40 = vector.broadcast %cst_24 : f32 to vector<32x4xf32>
    %41 = arith.mulf %40, %39 : vector<32x4xf32>
    %cst_25 = arith.constant 1.000000e-01 : f32
    %42 = vector.broadcast %cst_25 : f32 to vector<32x4xf32>
    %43 = arith.addf %42, %41 : vector<32x4xf32>
    %44 = tpu.iota {dimensions = array<i32: 1>} : vector<32x4xi32>
    %c2_i32 = arith.constant 2 : i32
    %45 = vector.broadcast %c2_i32 : i32 to vector<32x4xi32>
    %46 = arith.cmpi slt, %44, %45 : vector<32x4xi32>
    %47 = arith.select %46, %25, %43 : vector<32x4xi1>, vector<32x4xf32>
    %c0_26 = arith.constant 0 : index
    %c0_27 = arith.constant 0 : index
    %48 = vector.load %arg10[%c0_26, %c0_27] : memref<32x4xf32, #tpu.memory_space<vmem>>, vector<32x4xf32>
    tpu.vector_store %arg10[%c0_26, %c0_27], %47 {strides = array<i32>} : memref<32x4xf32, #tpu.memory_space<vmem>>, vector<32x4xf32>,
    return
  }
  func.func @transform_0(%arg0: i32) -> (i32, i32) {
    %c0_i32 = arith.constant 0 : i32
    %c0_i32_0 = arith.constant 0 : i32
    return %arg0, %c0_i32 : i32, i32
  }
  func.func @transform_1(%arg0: i32) -> (i32, i32) {
    %c0_i32 = arith.constant 0 : i32
    %c0_i32_0 = arith.constant 0 : i32
    return %arg0, %c0_i32 : i32, i32
  }
  func.func @transform_2(%arg0: i32) -> (i32, i32) {
    %c0_i32 = arith.constant 0 : i32
    %c0_i32_0 = arith.constant 0 : i32
    %c0_i32_1 = arith.constant 0 : i32
    return %c0_i32, %c0_i32_0 : i32, i32
  }
  func.func @transform_3(%arg0: i32) -> (i32, i32) {
    %c0_i32 = arith.constant 0 : i32
    %c0_i32_0 = arith.constant 0 : i32
    %c0_i32_1 = arith.constant 0 : i32
    return %c0_i32, %c0_i32_0 : i32, i32
  }
  func.func @transform_4(%arg0: i32) -> (i32, i32) {
    %c0_i32 = arith.constant 0 : i32
    %c0_i32_0 = arith.constant 0 : i32
    %c0_i32_1 = arith.constant 0 : i32
    return %c0_i32, %c0_i32_0 : i32, i32
  }
  func.func @transform_5(%arg0: i32) -> (i32, i32) {
    %c0_i32 = arith.constant 0 : i32
    %c0_i32_0 = arith.constant 0 : i32
    %c0_i32_1 = arith.constant 0 : i32
    return %c0_i32, %c0_i32_0 : i32, i32
  }
  func.func @transform_6(%arg0: i32) -> (i32, i32) {
    %c0_i32 = arith.constant 0 : i32
    %c0_i32_0 = arith.constant 0 : i32
    %c0_i32_1 = arith.constant 0 : i32
    return %c0_i32, %c0_i32_0 : i32, i32
  }
  func.func @transform_7(%arg0: i32) -> (i32, i32) {
    %c0_i32 = arith.constant 0 : i32
    %c0_i32_0 = arith.constant 0 : i32
    %c0_i32_1 = arith.constant 0 : i32
    return %c0_i32, %c0_i32_0 : i32, i32
  }
  func.func @transform_8(%arg0: i32) -> (i32, i32) {
    %c0_i32 = arith.constant 0 : i32
    %c0_i32_0 = arith.constant 0 : i32
    %c0_i32_1 = arith.constant 0 : i32
    return %c0_i32, %c0_i32_0 : i32, i32
  }
  func.func @transform_9(%arg0: i32) -> (i32, i32) {
    %c0_i32 = arith.constant 0 : i32
    %c0_i32_0 = arith.constant 0 : i32
    return %arg0, %c0_i32 : i32, i32
  }
}

</mosaic_0001>

<bundles_post_ra>
// kernel: tpu_custom_call.1
= control target key start
LH: loop header
LB: loop body
LE: loop exit
PB: predicated region body
PF: predicated region fallthrough
CT: control target
= control target key end

     0   :  { %14 = vsyncpa [#allocation3], 0  ;;  %s607_s30 = smov [#allocation2]   ;;  %s770_s0 = inlined_call_operand.vmem [shape: bf16[32,3], index: 0, kind: input, shape index: {}]   ;;  %s771_s1 = inlined_call_operand.vmem [shape: bf16[32,32], index: 1, kind: input, shape index: {}]   ;;  %s772_s2 = inlined_call_operand.hbm [shape: bf16[3,32], index: 2, kind: input, shape index: {}]   ;;  %s773_s3 = inlined_call_operand.vmem [shape: bf16[32,32], index: 3, kind: input, shape index: {}]   ;;  %s774_s4 = inlined_call_operand.vmem [shape: f32[1,32], index: 4, kind: input, shape index: {}]   ;;  %s775_s5 = inlined_call_operand.vmem [shape: bf16[32,32], index: 5, kind: input, shape index: {}]   ;;  %s776_s6 = inlined_call_operand.vmem [shape: f32[1,32], index: 6, kind: input, shape index: {}]   ;;  %s777_s7 = inlined_call_operand.vmem [shape: bf16[32,4], index: 7, kind: input, shape index: {}]   ;;  %s778_s8 = inlined_call_operand.vmem [shape: f32[1,4], index: 8, kind: input, shape index: {}]   ;;  %s779_s9 = inlined_call_operand.vmem [shape: f32[32,4], index: 9, kind: output, shape index: {}]  }
   0x1   :  { %s25_s10 = sshll.u32 %s607_s30, 4  ;;  %s583_s13 = scalar_lea.hbm %s772_s2, 32  ;;  %s26_s10 = int_to_ptr.vmem [resolvable:$true] %s25_s10 }
   0x2   :  { %p584_p0 = scmp.ne.s32.totalorder %s772_s2, %s583_s13  ;;  %p587_p1 = scmp.lt.u32.totalorder %s583_s13, %s772_s2 }
   0x4   :  { %p589_p2 = pnand %p587_p1, %p584_p0 }
   0x6   :  { %592 = shalt.err (!%p589_p2)
}
   0x7   :  { %s593_s18 = scalar_lea.vmem %s26_s10, 32  ;;  %p598_p4 = scmp.lt.s32.totalorder %s26_s10, %s26_s10 }
   0x8   :  { %p594_p3 = scmp.ne.s32.totalorder %s26_s10, %s593_s18  ;;  %p599_p5 = scmp.lt.s32.totalorder %s593_s18, %s593_s18 }
   0xa   :  { %p600_p6 = por %p599_p5, %p598_p4 }
   0xc   :  { %p601_p7 = pnand %p600_p6, %p594_p3 }
   0xe   :  { %604 = shalt.err (!%p601_p7)
}
   0xf   :  { %28 = dma.hbm_to_vmem [thread:$0]  %s772_s2, 32, %s26_s10, [#allocation3]  }
  0x10   :  { %605 = dma.done.wait [#allocation3], 32  }
  0x11   :  { %606 = vsyncadd [#allocation3], 4294967264  ;;  %vm153_vm0 = vcmask 1040384   ;;  %vm154_vm1 = vcmask 1041408   ;;  %v608_v0 = vmov 65535   ;;  %v557_v2 = vld [vmem:[%s773_s3] sm:$0xff]  }
  0x12   :  { %v155_v1 = vsel %vm153_vm0, 4294967295, %v608_v0  ;;  %v558_v3 = vld [vmem:[%s773_s3 + $0x8] sm:$0xff]   ;;  %vm80_vm2 = vcmask 261120   ;;  %521 = vmatprep.subr.bf16.mxu0 %v557_v2  ;;  %v559_v4 = vld [vmem:[%s771_s1] sm:$0xff]   ;;  %v49_v6 = vld [vmem:[#allocation2] sm:$0x3] }
  0x13   :  { %v156_v5 = vsel %vm154_vm1, %v155_v1, 0  ;;  %522 = vmatpush3.bf16.msra.mxu0 %v557_v2  ;;  %525 = vmatprep.mubr.msk.bf16.mxu0 %vm80_vm2, %v559_v4  ;;  %v560_v7 = vld [vmem:[%s771_s1 + $0x8] sm:$0xff]   ;;  %v561_v9 = vld [vmem:[%s770_s0] sm:$0xff]   ;;  %vm146_vm3 = vcmask 23552   ;;  %vm475_vm12 = vcmask 31744  }
  0x14   :  { %523 = vmatprep.subr.bf16.mxu0 %v558_v3  ;;  %v158_v8 = vand.u32 %v156_v5, %v49_v6  ;;  %v562_v10 = vld [vmem:[%s770_s0 + $0x8] sm:$0xff]   ;;  %v563_v11 = vld [vmem:[%s775_s5] sm:$0xff]  }
  0x15   :  { %535 = vmatprep.subr.bf16.mxu1 %v563_v11  ;;  %v564_v12 = vld [vmem:[%s775_s5 + $0x8] sm:$0xff]   ;;  %v495_v13 = vld [vmem:[%s774_s4] ss:$0 sm:$0xff] }
  0x16   :  { %536 = vmatpush3.bf16.msra.mxu1 %v563_v11  ;;  %v565_v28 = vld [vmem:[%s777_s7] sm:$0xff]   ;;  %v566_v29 = vld [vmem:[%s777_s7 + $0x8] sm:$0xff]  }
  0x17   :  { %524 = vmatpush3.bf16.msra.mxu0 %v558_v3  ;;  %537 = vmatprep.subr.bf16.mxu1 %v564_v12  ;;  %v496_v30 = vld [vmem:[%s776_s6] ss:$0 sm:$0xff] }
  0x18   :  { %529 = vmatprep.subr.bf16.mxu0 %v158_v8  ;;  %v501_v45 = vld [vmem:[%s778_s8] ss:$0 sm:$0xff] }
  0x1a   :  { %526 = vmatmul.mubr.msk.bf16.vlgmr.msra.gmra.mrb[0].mxu0 %vm80_vm2, %v560_v7  ;;  %538 = vmatpush3.bf16.msra.mxu1 %v564_v12  ;;  %v468_v12 = vlaneseq }
  0x1b   :  { %530 = vmatpush3.bf16.msra.mxu0 %v158_v8  ;;  %531 = vmatprep.mubr.msk.bf16.mxu0 %vm146_vm3, %v561_v9 }
  0x1c   :  { %543 = vmatprep.subr.bf16.mxu1 %v565_v28 }
  0x26   :  { %532 = vmatmul.mubr.msk.bf16.vlgmr.msra.gmra.mrb[0].mxu0 %vm146_vm3, %v562_v10 }
  0xf9   :  { %v533_v14 = vpop.f32.mrb[0].mxu0 }
  0xfa   :  { %v218_v15 = vadd.f32 %v533_v14, %v495_v13  ;;  %v194_v16 = vpop.f32.mrb[1].mxu0 }
  0xfb   :  { %v216_v17 = vadd.f32 %v495_v13, %v194_v16  ;;  %v534_v18 = vpop.f32.mrb[2].mxu0 }
  0xfc   :  { %v219_v19 = vadd.f32 %v534_v18, %v495_v13  ;;  %v197_v20 = vpop.f32.mrb[3].mxu0  ;;  %v222_v22 = vmax.f32 %v218_v15, 0.0  ;;  %v469_v18 = vand.u32 127, %v468_v12 }
  0xfd   :  { %v217_v21 = vadd.f32 %v495_v13, %v197_v20  ;;  %v220_v24 = vmax.f32 %v216_v17, 0.0 }
  0xfe   :  { %v223_v23 = vmax.f32 %v219_v19, 0.0  ;;  %vm470_vm11 = vcmp.lt.s32.totalorder %v469_v18, 2 }
  0xff   :  { %v221_v25 = vmax.f32 %v217_v21, 0.0 }
 0x100   :  { %v225_v26 = vpack.c.bf16 %v223_v23, %v222_v22 }
 0x101   :  { %v224_v27 = vpack.c.bf16 %v221_v25, %v220_v24 }
 0x103   :  { %539 = vmatprep.mubr.msk.bf16.mxu1 %vm80_vm2, %v224_v27 }
 0x104   :  { %540 = vmatmul.mubr.msk.bf16.vlgmr.msra.gmra.mrb[0].mxu1 %vm80_vm2, %v225_v26 }
 0x105   :  { %544 = vmatpush3.bf16.msra.mxu1 %v565_v28 }
 0x106   :  { %545 = vmatprep.subr.bf16.mxu1 %v566_v29 }
 0x109   :  { %546 = vmatpush3.bf16.msra.mxu1 %v566_v29 }
 0x1d7   :  { %v541_v31 = vpop.f32.mrb[0].mxu1 }
 0x1d8   :  { %v298_v32 = vadd.f32 %v541_v31, %v496_v30  ;;  %v289_v33 = vpop.f32.mrb[1].mxu1 }
 0x1d9   :  { %v290_v34 = vadd.f32 %v496_v30, %v289_v33  ;;  %v542_v35 = vpop.f32.mrb[2].mxu1 }
 0x1da   :  { %v301_v36 = vadd.f32 %v542_v35, %v496_v30  ;;  %v292_v37 = vpop.f32.mrb[3].mxu1  ;;  %v306_v39 = vmax.f32 %v298_v32, 0.0 }
 0x1db   :  { %v293_v38 = vadd.f32 %v496_v30, %v292_v37  ;;  %v304_v41 = vmax.f32 %v290_v34, 0.0 }
 0x1dc   :  { %v307_v40 = vmax.f32 %v301_v36, 0.0 }
 0x1dd   :  { %v305_v42 = vmax.f32 %v293_v38, 0.0 }
 0x1de   :  { %v309_v43 = vpack.c.bf16 %v307_v40, %v306_v39 }
 0x1df   :  { %v308_v44 = vpack.c.bf16 %v305_v42, %v304_v41 }
 0x1e1   :  { %547 = vmatprep.mubr.msk.bf16.mxu1 %vm80_vm2, %v308_v44 }
 0x1e2   :  { %548 = vmatmul.mubr.msk.bf16.vlgmr.msra.gmra.mrb[4].mxu1 %vm80_vm2, %v309_v43 }
 0x2b5   :  { %v549_v46 = vpop.f32.mrb[4].mxu1 }
 0x2b6   :  { %v716_v47 = vadd.f32 %v549_v46, %v501_v45  ;;  %v373_v48 = vpop.f32.mrb[5].mxu1 }
 0x2b7   :  { %v718_v49 = vadd.f32 %v501_v45, %v373_v48  ;;  %v550_v50 = vpop.f32.mrb[6].mxu1 }
 0x2b8   :  { %v402_v51 = vand.u32 2147483647, %v716_v47  ;;  %v721_v52 = vadd.f32 %v550_v50, %v501_v45  ;;  %v376_v53 = vpop.f32.mrb[7].mxu1  ;;  %v390_v22 = vmax.f32 %v716_v47, 0.0  ;;  %vm394_vm4 = vcmp.ne.f32.partialorder %v716_v47, %v716_v47 }
 0x2b9   :  { %v400_v54 = vand.u32 2147483647, %v718_v49  ;;  %v724_v55 = vadd.f32 %v501_v45, %v376_v53  ;;  %v388_v23 = vmax.f32 %v718_v49, 0.0  ;;  %vm392_vm5 = vcmp.ne.f32.partialorder %v718_v49, %v718_v49 }
 0x2ba   :  { %v406_v56 = vsub.f32 0.0, %v402_v51  ;;  %v403_v57 = vand.u32 2147483647, %v721_v52  ;;  %v391_v39 = vmax.f32 %v721_v52, 0.0  ;;  %vm395_vm10 = vcmp.ne.f32.partialorder %v721_v52, %v721_v52 }
 0x2bb   :  { %v404_v58 = vsub.f32 0.0, %v400_v54  ;;  %v401_v59 = vand.u32 2147483647, %v724_v55  ;;  %v389_v46 = vmax.f32 %v724_v55, 0.0  ;;  %vm393_vm13 = vcmp.ne.f32.partialorder %v724_v55, %v724_v55 }
 0x2bc   :  { %v412_v60 = vmul.f32 1.442695, %v406_v56  ;;  %v407_v61 = vsub.f32 0.0, %v403_v57 }
 0x2bd   :  { %v408_v62 = vmul.f32 1.442695, %v404_v58  ;;  %v405_v63 = vsub.f32 0.0, %v401_v59 }
 0x2be   :  { %567 = vpow2.f32 %v412_v60  ;;  %v414_v0 = vmul.f32 1.442695, %v407_v61 }
 0x2bf   :  { %569 = vpow2.f32 %v408_v62  ;;  %v410_v1 = vmul.f32 1.442695, %v405_v63 }
 0x2c0   :  { %571 = vpow2.f32 %v414_v0 }
 0x2c1   :  { %573 = vpow2.f32 %v410_v1 }
 0x2c8   :  { %v568_v2 = vpop.eup %567 }
 0x2c9   :  { %v570_v3 = vpop.eup %569  ;;  %v434_v4 = vadd.f32 1.0, %v568_v2  ;;  %v437_v10 = vmul.f32 -0.5, %v568_v2  ;;  %v440_v16 = vand.u32 2147483647, %v568_v2 }
 0x2ca   :  { %v572_v5 = vpop.eup %571  ;;  %v416_v6 = vadd.f32 1.0, %v570_v3  ;;  %v419_v11 = vmul.f32 -0.5, %v570_v3  ;;  %v422_v19 = vand.u32 2147483647, %v570_v3 }
 0x2cb   :  { %v574_v7 = vpop.eup %573  ;;  %575 = vlog2.f32 %v434_v4  ;;  %v443_v8 = vadd.f32 1.0, %v572_v5  ;;  %v446_v13 = vmul.f32 -0.5, %v572_v5  ;;  %v438_v14 = vadd.f32 1.0, %v437_v10 }
 0x2cc   :  { %577 = vlog2.f32 %v416_v6  ;;  %v425_v9 = vadd.f32 1.0, %v574_v7  ;;  %v428_v15 = vmul.f32 -0.5, %v574_v7  ;;  %v420_v17 = vadd.f32 1.0, %v419_v11 }
 0x2cd   :  { %579 = vlog2.f32 %v443_v8  ;;  %v447_v20 = vadd.f32 1.0, %v446_v13  ;;  %v449_v24 = vand.u32 2147483647, %v572_v5  ;;  %v439_v27 = vmul.f32 %v568_v2, %v438_v14 }
 0x2ce   :  { %581 = vlog2.f32 %v425_v9  ;;  %v429_v28 = vadd.f32 1.0, %v428_v15  ;;  %vm441_vm6 = vcmp.lt.f32.partialorder %v440_v16, 0.0004427343  ;;  %v421_v31 = vmul.f32 %v570_v3, %v420_v17 }
 0x2cf   :  { %v431_v32 = vand.u32 2147483647, %v574_v7  ;;  %vm423_vm7 = vcmp.lt.f32.partialorder %v422_v19, 0.0004427343  ;;  %v448_v35 = vmul.f32 %v572_v5, %v447_v20  ;;  %vm450_vm8 = vcmp.lt.f32.partialorder %v449_v24, 0.0004427343 }
 0x2d0   :  { %v430_v43 = vmul.f32 %v574_v7, %v429_v28 }
 0x2d1   :  { %vm432_vm9 = vcmp.lt.f32.partialorder %v431_v32, 0.0004427343 }
 0x2d5   :  { %v576_v21 = vpop.eup %575 }
 0x2d6   :  { %v578_v25 = vpop.eup %577  ;;  %v436_v26 = vmul.f32 0.6931472, %v576_v21 }
 0x2d7   :  { %v580_v29 = vpop.eup %579  ;;  %v418_v30 = vmul.f32 0.6931472, %v578_v25 }
 0x2d8   :  { %v442_v33 = vsel %vm441_vm6, %v439_v27, %v436_v26  ;;  %v445_v34 = vmul.f32 0.6931472, %v580_v29  ;;  %v582_v36 = vpop.eup %581 }
 0x2d9   :  { %v454_v37 = vadd.f32 %v442_v33, %v390_v22  ;;  %v424_v38 = vsel %vm423_vm7, %v421_v31, %v418_v30  ;;  %v427_v42 = vmul.f32 0.6931472, %v582_v36 }
 0x2da   :  { %v452_v40 = vadd.f32 %v424_v38, %v388_v23  ;;  %v451_v41 = vsel %vm450_vm8, %v448_v35, %v445_v34 }
 0x2db   :  { %v458_v44 = vsel %vm394_vm4, %v716_v47, %v454_v37  ;;  %v455_v45 = vadd.f32 %v451_v41, %v391_v39  ;;  %v433_v51 = vsel %vm432_vm9, %v430_v43, %v427_v42 }
 0x2dc   :  { %v462_v48 = vmul.f32 0.9, %v458_v44  ;;  %v456_v50 = vsel %vm392_vm5, %v718_v49, %v452_v40  ;;  %v453_v56 = vadd.f32 %v433_v51, %v389_v46 }
 0x2dd   :  { %v460_v53 = vmul.f32 0.9, %v456_v50  ;;  %v459_v54 = vsel %vm395_vm10, %v721_v52, %v455_v45 }
 0x2de   :  { %v466_v57 = vadd.f32 0.1, %v462_v48  ;;  %v463_v58 = vmul.f32 0.9, %v459_v54  ;;  %v457_v60 = vsel %vm393_vm13, %v724_v55, %v453_v56 }
 0x2df   :  { %v464_v59 = vadd.f32 0.1, %v460_v53  ;;  %v461_v63 = vmul.f32 0.9, %v457_v60 }
 0x2e0   :  { %v473_v61 = vsel %vm470_vm11, %v716_v47, %v466_v57  ;;  %v467_v62 = vadd.f32 0.1, %v463_v58 }
 0x2e1   :  { %478 = vst.msk [vmem:[%s779_s9 + $0x10] sm:$0xff] %vm475_vm12, %v473_v61  ;;  %v471_v0 = vsel %vm470_vm11, %v718_v49, %v464_v59  ;;  %v465_v2 = vadd.f32 0.1, %v461_v63 }
 0x2e2   :  { %476 = vst.msk [vmem:[%s779_s9] sm:$0xff] %vm475_vm12, %v471_v0  ;;  %v474_v1 = vsel %vm470_vm11, %v721_v52, %v467_v62 }
 0x2e3   :  { %479 = vst.msk [vmem:[%s779_s9 + $0x18] sm:$0xff] %vm475_vm12, %v474_v1  ;;  %v472_v47 = vsel %vm470_vm11, %v724_v55, %v465_v2 }
 0x2e4   :  { %477 = vst.msk [vmem:[%s779_s9 + $0x8] sm:$0xff] %vm475_vm12, %v472_v47 }
 0x2e5   :  { %484 = vsyncpa [#allocation3], 1 }

</bundles_post_ra>
